<compile_context>
chip_gen: v5e
topology: v5e:2x2
jax: 0.10.0
libtpu: 0.0.40
codegen_flags: <defaults>
</compile_context>

<pallas_src>
import functools

import jax
import jax.numpy as jnp
from jax.experimental import pallas as pl
from jax.experimental.pallas import tpu as pltpu


def _conv2d_kernel(x_ref, w_ref, b_ref, o_ref, *, TH, OW, KH, KW,
                   SH, SW, DH, DW, Cin, Cout):
    # x_ref : (1, 1, strip_h, Wp, Cin)  halo'd input row strip (compute dtype)
    # w_ref : (KH*KW*Cin, Cout)         im2col-ordered weights (compute dtype)
    # b_ref : (1, OW*Cout)              bias tiled over OW (f32)
    # o_ref : (1, TH, OW*Cout)          lane-dense output strip
    patches = []
    if SH == 1 and SW == 1:
        xs = x_ref[0, 0]                                  # (strip_h, Wp, Cin)
    for kh in range(KH):
        h0 = kh * DH
        for kw in range(KW):
            w0 = kw * DW
            if SH == 1 and SW == 1:
                p = xs[h0:h0 + TH, w0:w0 + OW, :]
            else:
                # stride > 1: take the strided window on the ref itself
                # (no strided slicing of an in-register value).
                p = x_ref[0, 0, pl.ds(h0, TH, stride=SH),
                          pl.ds(w0, OW, stride=SW), :]
            patches.append(p)                             # (TH, OW, Cin)

    # One deep im2col matmul instead of KH*KW shallow (K=Cin) matmuls.
    im2col = jnp.concatenate(patches, axis=-1)            # (TH, OW, KH*KW*Cin)
    im2col = im2col.reshape(TH * OW, KH * KW * Cin)       # collapse majors
    acc = jnp.dot(im2col, w_ref[...],
                  preferred_element_type=jnp.float32)     # (TH*OW, Cout) f32
    acc = acc.reshape(TH, OW, Cout)                       # split major (free)

    # Fold (OW, Cout) into the lane axis -> one dense, 128-lane-wide store per
    # strip instead of Cout-lane masked stores.  (Slices + lane concat are the
    # safe spelling of this sublane->lane relayout; sized for OW*Cout ~ 128.)
    out2d = jnp.concatenate([acc[:, ow, :] for ow in range(OW)], axis=-1)
    out2d = out2d + b_ref[...]                            # (1, OW*Cout) bcast
    o_ref[0] = out2d.astype(o_ref.dtype)


def _pick_tile_h(OH, N, SH, KH, DH, Wp, Cin, itemsize):
    """Largest multiple-of-8 row-strip height that divides OH, fits a
    conservative (v7x-safe) VMEM budget, and still yields >= 4 grid steps."""
    budget = 8 * 2 ** 20          # per double-buffered input strip
    fitting = []
    for th in (64, 48, 32, 24, 16, 8):
        if OH % th:
            continue
        strip_h = (th - 1) * SH + (KH - 1) * DH + 1
        # lane dim is padded to the 128-wide vreg; 2x for double buffering.
        strip_bytes = 2 * strip_h * Wp * max(Cin, 128) * itemsize
        if strip_bytes <= budget:
            fitting.append(th)
    if not fitting:
        return OH                 # awkward / tiny OH: one strip per image
    for th in fitting:            # biggest first
        if N * (OH // th) >= 4:   # enough steps to pipeline / feed 2 TCs
            return th
    return fitting[-1]


def conv2d_pallas(x_nchw, weight_oihw, bias, *, stride=1, padding=0,
                  dilation=1, compute_dtype=jnp.bfloat16):
    """Equivalent of Conv2d.forward(x, drop=0.0), groups=1, zeros padding."""
    N, Cin, H, W = x_nchw.shape
    Cout, Cin_w, KH, KW = weight_oihw.shape
    assert Cin == Cin_w, "groups != 1 not supported"
    SH = SW = int(stride)
    PH = PW = int(padding)
    DH = DW = int(dilation)
    OH = (H + 2 * PH - DH * (KH - 1) - 1) // SH + 1
    OW = (W + 2 * PW - DW * (KW - 1) - 1) // SW + 1
    Wp = W + 2 * PW

    TH = _pick_tile_h(OH, N, SH, KH, DH, Wp, Cin,
                      jnp.dtype(compute_dtype).itemsize)
    R = OH // TH
    strip_h = (TH - 1) * SH + (KH - 1) * DH + 1

    # ---- plain-JAX glue: layout, padding, halo'd strips, weight repack ----
    x_nhwc = jnp.transpose(x_nchw, (0, 2, 3, 1)).astype(compute_dtype)
    x_pad = jnp.pad(x_nhwc, ((0, 0), (PH, PH), (PW, PW), (0, 0)))
    # (N, R, strip_h, Wp, Cin): each row strip carries its own halo so the
    # BlockSpec pipeline fetches plain non-overlapping blocks.
    strips = jnp.stack(
        [x_pad[:, r * TH * SH:r * TH * SH + strip_h] for r in range(R)],
        axis=1)
    # im2col-ordered weights: (KH, KW, Cin, Cout) -> (KH*KW*Cin, Cout).
    w2d = jnp.transpose(weight_oihw, (2, 3, 1, 0)).reshape(
        KH * KW * Cin, Cout).astype(compute_dtype)
    # Bias tiled to the lane-dense output layout: index ow*Cout + c -> bias[c].
    b_tiled = jnp.tile(bias.astype(jnp.float32), OW).reshape(1, OW * Cout)

    kernel = functools.partial(
        _conv2d_kernel, TH=TH, OW=OW, KH=KH, KW=KW,
        SH=SH, SW=SW, DH=DH, DW=DW, Cin=Cin, Cout=Cout)

    out3 = pl.pallas_call(
        kernel,
        out_shape=jax.ShapeDtypeStruct((N, OH, OW * Cout), x_nchw.dtype),
        grid_spec=pltpu.PrefetchScalarGridSpec(
            num_scalar_prefetch=0,
            grid=(N, R),                        # batch x row-strips
            in_specs=[
                pl.BlockSpec((1, 1, strip_h, Wp, Cin),
                             lambda n, r: (n, r, 0, 0, 0)),
                # Constant index_maps: weight / bias stay VMEM-resident,
                # no per-step re-DMA.
                pl.BlockSpec((KH * KW * Cin, Cout), lambda n, r: (0, 0)),
                pl.BlockSpec((1, OW * Cout), lambda n, r: (0, 0)),
            ],
            out_specs=pl.BlockSpec((1, TH, OW * Cout),
                                   lambda n, r: (n, r, 0)),
        ),
        compiler_params=pltpu.CompilerParams(
            dimension_semantics=("parallel", "parallel"),
            # Explicit scoped-VMEM cap with headroom; safe on v7x (64 MiB
            # physical) as well as v5e/v6e (128 MiB).
            vmem_limit_bytes=32 * 1024 * 1024,
        ),
    )(strips, w2d, b_tiled)

    # Unfold the lane-dense output and return NCHW like torch.nn.Conv2d.
    out_nhwc = out3.reshape(N, OH, OW, Cout)
    return jnp.transpose(out_nhwc, (0, 3, 1, 2))


if __name__ == "__main__":
    # Module config: Conv2d(in_channels=4, out_channels=8, kernel_size=3,
    #                       stride=1, padding=1, bias=True)
    N, Cin, H, W = 2, 4, 16, 16
    Cout, K = 8, 3
    stride, padding, dilation = 1, 1, 1

    key = jax.random.PRNGKey(0)
    kx, kw, kb = jax.random.split(key, 3)

    x = jax.random.normal(kx, (N, Cin, H, W), dtype=jnp.float32)
    # Deterministic parameter init (kaiming-uniform-like bound, as in PyTorch).
    fan_in = Cin * K * K
    bound = 1.0 / (fan_in ** 0.5)
    weight = jax.random.uniform(kw, (Cout, Cin, K, K), jnp.float32,
                                minval=-bound, maxval=bound)
    bias = jax.random.uniform(kb, (Cout,), jnp.float32,
                              minval=-bound, maxval=bound)

    out = conv2d_pallas(x, weight, bias,
                        stride=stride, padding=padding, dilation=dilation)
    out = jax.block_until_ready(out)

    # Reference with the same bf16-operand / f32-accumulation quantization.
    ref = jax.lax.conv_general_dilated(
        x.astype(jnp.bfloat16), weight.astype(jnp.bfloat16),
        window_strides=(stride, stride),
        padding=[(padding, padding), (padding, padding)],
        rhs_dilation=(dilation, dilation),
        dimension_numbers=("NCHW", "OIHW", "NCHW"),
        preferred_element_type=jnp.float32,
    ) + bias.reshape(1, Cout, 1, 1)

    assert out.shape == (N, Cout, H, W)
    assert out.dtype == x.dtype
    # Tolerance dominated by bf16 operand quantization, not the kernel.
    assert jnp.allclose(out, ref, atol=2e-2, rtol=2e-2), \
        float(jnp.max(jnp.abs(out - ref)))

    print("KERNEL_OK")
</pallas_src>

<mosaic_0001>
module attributes {stable_mosaic.version = 11 : i64} {
  func.func @_conv2d_kernel(%arg0: i32, %arg1: i32, %arg2: memref<1x1x10x18x4xbf16, #tpu.memory_space<vmem>>, %arg3: memref<36x8xbf16, #tpu.memory_space<vmem>>, %arg4: memref<1x128xf32, #tpu.memory_space<vmem>>, %arg5: memref<1x8x128xf32, #tpu.memory_space<vmem>>) attributes {dimension_semantics = [#tpu.dimension_semantics<parallel>, #tpu.dimension_semantics<parallel>], iteration_bounds = array<i64: 2, 2>, scalar_prefetch = 0 : i64, scratch_operands = 0 : i64, tpu.core_type = #tpu.core_type<tc>, window_params = [{transform_indices = @transform_0, window_bounds = array<i64: 1, 1, 10, 18, 4>}, {pipeline_mode = #tpu.pipeline_mode<synchronous>, transform_indices = @transform_1, window_bounds = array<i64: 36, 8>}, {pipeline_mode = #tpu.pipeline_mode<synchronous>, transform_indices = @transform_2, window_bounds = array<i64: 1, 128>}, {transform_indices = @transform_3, window_bounds = array<i64: 1, 8, 128>}]} {
    %c0 = arith.constant 0 : index
    %c0_0 = arith.constant 0 : index
    %c0_1 = arith.constant 0 : index
    %c0_2 = arith.constant 0 : index
    %c0_3 = arith.constant 0 : index
    %0 = vector.load %arg2[%c0, %c0_0, %c0_1, %c0_2, %c0_3] : memref<1x1x10x18x4xbf16, #tpu.memory_space<vmem>>, vector<1x1x10x18x4xbf16>
    %1 = vector.shape_cast %0 : vector<1x1x10x18x4xbf16> to vector<10x18x4xbf16>
    %2 = vector.extract_strided_slice %1 {offsets = [0, 0, 0], sizes = [8, 16, 4], strides = [1, 1, 1]} : vector<10x18x4xbf16> to vector<8x16x4xbf16>
    %3 = vector.extract_strided_slice %1 {offsets = [0, 1, 0], sizes = [8, 16, 4], strides = [1, 1, 1]} : vector<10x18x4xbf16> to vector<8x16x4xbf16>
    %4 = vector.extract_strided_slice %1 {offsets = [0, 2, 0], sizes = [8, 16, 4], strides = [1, 1, 1]} : vector<10x18x4xbf16> to vector<8x16x4xbf16>
    %5 = vector.extract_strided_slice %1 {offsets = [1, 0, 0], sizes = [8, 16, 4], strides = [1, 1, 1]} : vector<10x18x4xbf16> to vector<8x16x4xbf16>
    %6 = vector.extract_strided_slice %1 {offsets = [1, 1, 0], sizes = [8, 16, 4], strides = [1, 1, 1]} : vector<10x18x4xbf16> to vector<8x16x4xbf16>
    %7 = vector.extract_strided_slice %1 {offsets = [1, 2, 0], sizes = [8, 16, 4], strides = [1, 1, 1]} : vector<10x18x4xbf16> to vector<8x16x4xbf16>
    %8 = vector.extract_strided_slice %1 {offsets = [2, 0, 0], sizes = [8, 16, 4], strides = [1, 1, 1]} : vector<10x18x4xbf16> to vector<8x16x4xbf16>
    %9 = vector.extract_strided_slice %1 {offsets = [2, 1, 0], sizes = [8, 16, 4], strides = [1, 1, 1]} : vector<10x18x4xbf16> to vector<8x16x4xbf16>
    %10 = vector.extract_strided_slice %1 {offsets = [2, 2, 0], sizes = [8, 16, 4], strides = [1, 1, 1]} : vector<10x18x4xbf16> to vector<8x16x4xbf16>
    %11 = tpu.concatenate %2, %3, %4, %5, %6, %7, %8, %9, %10 in 2 : vector<8x16x4xbf16>, vector<8x16x4xbf16>, vector<8x16x4xbf16>, vector<8x16x4xbf16>, vector<8x16x4xbf16>, vector<8x16x4xbf16>, vector<8x16x4xbf16>, vector<8x16x4xbf16>, vector<8x16x4xbf16> -> vector<8x16x36xbf16>
    %12 = vector.shape_cast %11 : vector<8x16x36xbf16> to vector<128x36xbf16>
    %c0_4 = arith.constant 0 : index
    %c0_5 = arith.constant 0 : index
    %13 = vector.load %arg3[%c0_4, %c0_5] : memref<36x8xbf16, #tpu.memory_space<vmem>>, vector<36x8xbf16>
    %cst = arith.constant dense<0.000000e+00> : vector<128x8xf32>
    %14 = tpu.matmul %12, %13, %cst {dimension_numbers = #tpu.dot_dimension_numbers<[1], [0], [0], [1], [0, 0, 1, 1], [], []>} : vector<128x36xbf16>, vector<36x8xbf16>, vector<128x8xf32> -> vector<128x8xf32>
    %15 = vector.shape_cast %14 : vector<128x8xf32> to vector<8x16x8xf32>
    %16 = vector.extract_strided_slice %15 {offsets = [0, 0, 0], sizes = [8, 1, 8], strides = [1, 1, 1]} : vector<8x16x8xf32> to vector<8x1x8xf32>
    %17 = vector.shape_cast %16 : vector<8x1x8xf32> to vector<8x8xf32>
    %18 = vector.extract_strided_slice %15 {offsets = [0, 1, 0], sizes = [8, 1, 8], strides = [1, 1, 1]} : vector<8x16x8xf32> to vector<8x1x8xf32>
    %19 = vector.shape_cast %18 : vector<8x1x8xf32> to vector<8x8xf32>
    %20 = vector.extract_strided_slice %15 {offsets = [0, 2, 0], sizes = [8, 1, 8], strides = [1, 1, 1]} : vector<8x16x8xf32> to vector<8x1x8xf32>
    %21 = vector.shape_cast %20 : vector<8x1x8xf32> to vector<8x8xf32>
    %22 = vector.extract_strided_slice %15 {offsets = [0, 3, 0], sizes = [8, 1, 8], strides = [1, 1, 1]} : vector<8x16x8xf32> to vector<8x1x8xf32>
    %23 = vector.shape_cast %22 : vector<8x1x8xf32> to vector<8x8xf32>
    %24 = vector.extract_strided_slice %15 {offsets = [0, 4, 0], sizes = [8, 1, 8], strides = [1, 1, 1]} : vector<8x16x8xf32> to vector<8x1x8xf32>
    %25 = vector.shape_cast %24 : vector<8x1x8xf32> to vector<8x8xf32>
    %26 = vector.extract_strided_slice %15 {offsets = [0, 5, 0], sizes = [8, 1, 8], strides = [1, 1, 1]} : vector<8x16x8xf32> to vector<8x1x8xf32>
    %27 = vector.shape_cast %26 : vector<8x1x8xf32> to vector<8x8xf32>
    %28 = vector.extract_strided_slice %15 {offsets = [0, 6, 0], sizes = [8, 1, 8], strides = [1, 1, 1]} : vector<8x16x8xf32> to vector<8x1x8xf32>
    %29 = vector.shape_cast %28 : vector<8x1x8xf32> to vector<8x8xf32>
    %30 = vector.extract_strided_slice %15 {offsets = [0, 7, 0], sizes = [8, 1, 8], strides = [1, 1, 1]} : vector<8x16x8xf32> to vector<8x1x8xf32>
    %31 = vector.shape_cast %30 : vector<8x1x8xf32> to vector<8x8xf32>
    %32 = vector.extract_strided_slice %15 {offsets = [0, 8, 0], sizes = [8, 1, 8], strides = [1, 1, 1]} : vector<8x16x8xf32> to vector<8x1x8xf32>
    %33 = vector.shape_cast %32 : vector<8x1x8xf32> to vector<8x8xf32>
    %34 = vector.extract_strided_slice %15 {offsets = [0, 9, 0], sizes = [8, 1, 8], strides = [1, 1, 1]} : vector<8x16x8xf32> to vector<8x1x8xf32>
    %35 = vector.shape_cast %34 : vector<8x1x8xf32> to vector<8x8xf32>
    %36 = vector.extract_strided_slice %15 {offsets = [0, 10, 0], sizes = [8, 1, 8], strides = [1, 1, 1]} : vector<8x16x8xf32> to vector<8x1x8xf32>
    %37 = vector.shape_cast %36 : vector<8x1x8xf32> to vector<8x8xf32>
    %38 = vector.extract_strided_slice %15 {offsets = [0, 11, 0], sizes = [8, 1, 8], strides = [1, 1, 1]} : vector<8x16x8xf32> to vector<8x1x8xf32>
    %39 = vector.shape_cast %38 : vector<8x1x8xf32> to vector<8x8xf32>
    %40 = vector.extract_strided_slice %15 {offsets = [0, 12, 0], sizes = [8, 1, 8], strides = [1, 1, 1]} : vector<8x16x8xf32> to vector<8x1x8xf32>
    %41 = vector.shape_cast %40 : vector<8x1x8xf32> to vector<8x8xf32>
    %42 = vector.extract_strided_slice %15 {offsets = [0, 13, 0], sizes = [8, 1, 8], strides = [1, 1, 1]} : vector<8x16x8xf32> to vector<8x1x8xf32>
    %43 = vector.shape_cast %42 : vector<8x1x8xf32> to vector<8x8xf32>
    %44 = vector.extract_strided_slice %15 {offsets = [0, 14, 0], sizes = [8, 1, 8], strides = [1, 1, 1]} : vector<8x16x8xf32> to vector<8x1x8xf32>
    %45 = vector.shape_cast %44 : vector<8x1x8xf32> to vector<8x8xf32>
    %46 = vector.extract_strided_slice %15 {offsets = [0, 15, 0], sizes = [8, 1, 8], strides = [1, 1, 1]} : vector<8x16x8xf32> to vector<8x1x8xf32>
    %47 = vector.shape_cast %46 : vector<8x1x8xf32> to vector<8x8xf32>
    %48 = tpu.concatenate %17, %19, %21, %23, %25, %27, %29, %31, %33, %35, %37, %39, %41, %43, %45, %47 in 1 : vector<8x8xf32>, vector<8x8xf32>, vector<8x8xf32>, vector<8x8xf32>, vector<8x8xf32>, vector<8x8xf32>, vector<8x8xf32>, vector<8x8xf32>, vector<8x8xf32>, vector<8x8xf32>, vector<8x8xf32>, vector<8x8xf32>, vector<8x8xf32>, vector<8x8xf32>, vector<8x8xf32>, vector<8x8xf32> -> vector<8x128xf32>
    %c0_6 = arith.constant 0 : index
    %c0_7 = arith.constant 0 : index
    %49 = vector.load %arg4[%c0_6, %c0_7] : memref<1x128xf32, #tpu.memory_space<vmem>>, vector<1x128xf32>
    %50 = vector.broadcast %49 : vector<1x128xf32> to vector<8x128xf32>
    %51 = arith.addf %48, %50 : vector<8x128xf32>
    %c0_8 = arith.constant 0 : index
    %c0_9 = arith.constant 0 : index
    %c0_10 = arith.constant 0 : index
    %52 = vector.load %arg5[%c0_8, %c0_9, %c0_10] : memref<1x8x128xf32, #tpu.memory_space<vmem>>, vector<1x8x128xf32>
    %53 = vector.shape_cast %52 : vector<1x8x128xf32> to vector<8x128xf32>
    %54 = vector.shape_cast %51 : vector<8x128xf32> to vector<1x8x128xf32>
    tpu.vector_store %arg5[%c0_8, %c0_9, %c0_10], %54 {strides = array<i32>} : memref<1x8x128xf32, #tpu.memory_space<vmem>>, vector<1x8x128xf32>,
    return
  }
  func.func @transform_0(%arg0: i32, %arg1: i32) -> (i32, i32, i32, i32, i32) {
    %c0_i32 = arith.constant 0 : i32
    %c0_i32_0 = arith.constant 0 : i32
    %c0_i32_1 = arith.constant 0 : i32
    %c0_i32_2 = arith.constant 0 : i32
    return %arg0, %arg1, %c0_i32, %c0_i32_0, %c0_i32_1 : i32, i32, i32, i32, i32
  }
  func.func @transform_1(%arg0: i32, %arg1: i32) -> (i32, i32) {
    %c0_i32 = arith.constant 0 : i32
    %c0_i32_0 = arith.constant 0 : i32
    %c0_i32_1 = arith.constant 0 : i32
    return %c0_i32, %c0_i32_0 : i32, i32
  }
  func.func @transform_2(%arg0: i32, %arg1: i32) -> (i32, i32) {
    %c0_i32 = arith.constant 0 : i32
    %c0_i32_0 = arith.constant 0 : i32
    %c0_i32_1 = arith.constant 0 : i32
    return %c0_i32, %c0_i32_0 : i32, i32
  }
  func.func @transform_3(%arg0: i32, %arg1: i32) -> (i32, i32, i32) {
    %c0_i32 = arith.constant 0 : i32
    %c0_i32_0 = arith.constant 0 : i32
    return %arg0, %arg1, %c0_i32 : i32, i32, i32
  }
}

</mosaic_0001>

<bundles_post_ra>
// kernel: tpu_custom_call.1
= control target key start
LH: loop header
LB: loop body
LE: loop exit
PB: predicated region body
PF: predicated region fallthrough
CT: control target
= control target key end

     0   :  { %8 = vsyncpa [#allocation3], 0  ;;  %s2380_s0 = inlined_call_operand.vmem [shape: bf16[2,2,10,18,4], index: 0, kind: input, shape index: {}]   ;;  %s2381_s1 = inlined_call_operand.vmem [shape: bf16[36,8], index: 1, kind: input, shape index: {}]   ;;  %s2382_s2 = inlined_call_operand.vmem [shape: f32[1,128], index: 2, kind: input, shape index: {}]   ;;  %s2383_s3 = inlined_call_operand.hbm [shape: f32[2,16,128], index: 3, kind: output, shape index: {}]  }
   0x1   :  { %10 = vsyncpa [#allocation3 + $0x1], 0  ;;  %s1555_s12 = smov 0   ;;  %s1557_s13 = smov 0  }
   0x2   :  { %s1559_s14 = smov 0   ;;  %s1561_s15 = smov 0  }
   0x3   :  { %s1563_s16 = smov 0   ;;  %s1565_s17 = smov 0  }
   0x4   :  { %s1567_s18 = smov 0   ;;  %s1569_s19 = smov 0  }
   0x5 LB: > { %s1238_s20 = sadd.s32 4294967295, %s1514_s19   ;;  %s1239_s21 = sadd.s32 4294967294, %s1514_s19   ;;  %s1514_s19 = sphi %s1569_s19, %s16_s19   ;;  %s1510_s18 = sphi %s1567_s18, %s2411_s18   ;;  %s1506_s17 = sphi %s1565_s17, %s2410_s17   ;;  %s1502_s16 = sphi %s1563_s16, %s2409_s16   ;;  %s1498_s15 = sphi %s1561_s15, %s2408_s15   ;;  %s1494_s14 = sphi %s1559_s14, %s2407_s14   ;;  %s1490_s13 = sphi %s1557_s13, %s2406_s13   ;;  %s1486_s12 = sphi %s1555_s12, %s2405_s12  }
   0x6   : > { %s25_s22 = sadd.s32 1, %s1506_s17  ;;  %s28_s23 = sadd.s32 1, %s1510_s18 }
   0x7   : > { %p26_p0 = scmp.ge.s32.totalorder %s25_s22, 2  ;;  %p117_p1 = scmp.ne.s32.totalorder %s1494_s14, %s1490_s13 }
   0x8   : > { %p118_p2 = scmp.eq.s32.totalorder %s1238_s20, 3  ;;  %p123_p5 = scmp.ne.s32.totalorder %s1490_s13, %s1486_s12 }
   0x9   : > { %s2413_s22 = smov (%p26_p0, %s25_s22), 0  ;;  %s2415_s23 = smov (!%p26_p0, %s28_s23), %s1510_s18 }
   0xa   : > { %s103_s24 = ssub.s32 %s1506_s17, %s2413_s22  ;;  %p1606_p3 = por %p118_p2, %p117_p1 }
   0xb   : > { %p30_p4 = scmp.ge.s32.totalorder %s2415_s23, 2  ;;  %p124_p6 = scmp.eq.s32.totalorder %s1239_s21, 3 }
   0xc   : > { %p1242_p7 = scmp.ge.s32.totalorder %s1514_s19, 1  ;;  %p160_p9 = scmp.lt.s32.totalorder %s1514_s19, 5 }
   0xd   : > { %s2417_s23 = smov (%p30_p4, %s2415_s23), 0  ;;  %p1615_p8 = por %p124_p6, %p123_p5 }
   0xe   : > { %s102_s27 = ssub.s32 %s1510_s18, %s2417_s23  ;;  %s107_s28 = sadd.s32 1, %s1494_s14 }
   0xf   : > { %s104_s29 = sor.u32 %s103_s24, %s102_s27  ;;  %p161_p10 = pnand %p1242_p7, %p160_p9 }
  0x10   : > { %p105_p11 = scmp.eq.s32.totalorder %s104_s29, 0  ;;  %p188_p12 = scmp.lt.s32.totalorder (!%p161_p10), %s1502_s16, 1 }
  0x11   : > { %164 = sbr.rel (%p161_p10) target bundleno = 615 (0x267), region = 32  ;;  %p190_p13 = scmp.lt.s32.totalorder (!%p161_p10), %s1498_s15, 1 }
  0x12   : > { %s1624_s30 = scalar_select %p105_p11, %s1494_s14, %s107_s28  }
  0x13   : > { %s1516_s21 = smov (!%p161_p10), 12   ;;  %s1517_s24 = smov (!%p161_p10), 8  }
  0x14   : > { %s1518_s27 = smov (!%p161_p10), 4   ;;  %s1519_s28 = smov (!%p161_p10), 16  }
  0x15   : > { %s1520_s29 = smov (!%p161_p10), 20   ;;  %s1302_s10 = sshll.u32 (!%p161_p10), %s1502_s16, 1 }
  0x16   : > { %s189_s4 = scalar_select %p188_p12, %s1502_s16, 1  ;;  %vm405_vm0 = vcmask 1046528   ;;  %vm292_vm1 = vsmask.f32 7424  ;;  %vm588_vm2 = vcmask 31744   ;;  %vm605_vm3 = vcmask 64512  }
  0x17   : > { %s191_s5 = scalar_select %p190_p13, %s1498_s15, 1  ;;  %vm761_vm4 = vcmask 1041408   ;;  %vm622_vm5 = vcmask 97280   ;;  %vm639_vm6 = vcmask 130048   ;;  %vm656_vm7 = vcmask 162816  }
  0x18   : > { %s1328_s6 = smul.u32 60, %s189_s4  ;;  %s1521_s4 = smov 24   ;;  %vm673_vm8 = vcmask 195584   ;;  %vm690_vm9 = vcmask 228352   ;;  %vm707_vm10 = vcmask 261120   ;;  %vm744_vm11 = vcmask 293888  }
  0x19   : > { %s1327_s7 = smul.u32 30, %s191_s5  ;;  %s1522_s5 = smov 28   ;;  %vm823_vm12 = vcmask 1041409   ;;  %vm826_vm13 = vcmask 1042434   ;;  %vm829_vm14 = vcmask 1043459   ;;  %vm832_vm15 = vcmask 1044484  }
  0x1a   : > { %s185_s11 = sand.u32 1, %s1490_s13  }
  0x1b   : > { %s194_s8 = sadd.s32 %s1328_s6, %s1327_s7  ;;  %s1523_s6 = smov 32  }
  0x1c   : > { %s1244_s9 = sshll.u32 %s194_s8, 2  ;;  %s1532_s7 = smov 120  }
  0x1d   : > { %s1633_s20 = scalar_lea.vmem %s2380_s0, %s1244_s9  ;;  %s1533_s8 = smov 112  }
  0x1e   : > { %v1636_v0 = vld [vmem:[%s1633_s20 + $0x30] sm:$0xff]  ;;  %v212_v1 = vld [vmem:[%s1633_s20 + $0x38] sm:$0x1]  ;;  %v1640_v2 = vld [vmem:[%s1633_s20] sm:$0xff]  ;;  %s1534_s9 = smov 104  }
  0x1f   : > { %v280_v3 = vunpack.c.l.b16 %v212_v1  ;;  %v200_v4 = vld [vmem:[%s1633_s20 + $0x8] sm:$0x1]  ;;  %v1644_v5 = vld [vmem:[%s1633_s20 + $0x3c] sm:$0xff]  ;;  %v294_v8 = vshrl.u32 %v1640_v2, 16  ;;  %v296_v9 = vshll.u32 %v1640_v2, 16  ;;  %v418_v12 = vrot.slane %v1636_v0, 1 }
  0x20   : > { %v1647_v6 = vld [vmem:[%s1633_s20 + $0x48] sm:$0xff]  ;;  %v276_v7 = vunpack.c.l.b16 %v200_v4  ;;  %v218_v10 = vld [vmem:[%s1633_s20 + $0x50] sm:$0x1]  ;;  %459 = vrot.lane.b32.xlu2 %v1644_v5, %s1516_s21  ;;  %v406_v17 = vrot.slane %v1640_v2, 1  ;;  %v344_v23 = vshll.u32 %v1636_v0, 16  ;;  %v1667_v31 = vld [vmem:[%s1633_s20 + $0x18] sm:$0xff] }
  0x21   : > { %v288_v11 = vpack.c.b16 %v280_v3, %v280_v3  ;;  %v282_v13 = vunpack.c.l.b16 %v218_v10  ;;  %v298_v15 = vrot.slane %v296_v9, 1  ;;  %v368_v16 = vshll.u32 %v1647_v6, 16  ;;  %v215_v24 = vld [vmem:[%s1633_s20 + $0x44] sm:$0x1]  ;;  %v206_v32 = vld [vmem:[%s1633_s20 + $0x20] sm:$0x1] }
  0x22   : > { %v284_v14 = vpack.c.b16 %v276_v7, %v276_v7  ;;  %v366_v26 = vshrl.u32 %v1647_v6, 16  ;;  %v424_v33 = vrot.slane %v1647_v6, 1  ;;  %v281_v35 = vunpack.c.l.b16 %v215_v24  ;;  %v221_v50 = vld [vmem:[%s1633_s20 + $0x5c] sm:$0x1]  ;;  %v1694_v62 = vld [vmem:[%s1633_s20 + $0x54] sm:$0xff] }
  0x23   : > { %v419_v18 = vrot.slane %v288_v11, 1  ;;  %v290_v19 = vpack.c.b16 %v282_v13, %v282_v13  ;;  %v299_v20 = vor.u32 %v298_v15, %v294_v8  ;;  %v370_v27 = vrot.slane %v368_v16, 1  ;;  %v203_v8 = vld [vmem:[%s1633_s20 + $0x14] sm:$0x1] }
  0x24   : > { %v301_v21 = vshll.u32 %v284_v14, 16  ;;  %v407_v22 = vrot.slane %v284_v14, 1  ;;  %v342_v37 = vshrl.u32 %v1636_v0, 16  ;;  %v346_v38 = vrot.slane %v344_v23, 1 }
  0x25   : > { %v1660_v25 = vsel %vm405_vm0, %v418_v12, %v419_v18  ;;  %v373_v28 = vshll.u32 %v290_v19, 16  ;;  %v425_v34 = vrot.slane %v290_v19, 1  ;;  %v371_v39 = vor.u32 %v370_v27, %v366_v26 }
  0x26   : > { %438 = vrot.lane.b32.xlu0 %v1660_v25, %s1517_s24  ;;  %v303_v29 = vrot.slane %v301_v21, 1  ;;  %v408_v30 = vsel %vm405_vm0, %v406_v17, %v407_v22  ;;  %v349_v41 = vshll.u32 %v288_v11, 16  ;;  %v278_v42 = vunpack.c.l.b16 %v206_v32  ;;  %v1714_v17 = vld [vmem:[%s1633_s20 + $0xc] sm:$0xff]  ;;  %v1732_v32 = vld [vmem:[%s1633_s20 + $0x24] sm:$0xff] }
  0x27   : > { %v375_v40 = vrot.slane %v373_v28, 1  ;;  %v289_v43 = vpack.c.b16 %v281_v35, %v281_v35  ;;  %v356_v44 = vshll.u32 %v1644_v5, 16  ;;  %v318_v45 = vshrl.u32 %v1667_v31, 16  ;;  %v209_v22 = vld [vmem:[%s1633_s20 + $0x2c] sm:$0x1] }
  0x28   : > { %v304_v36 = vsel %vm292_vm1, %v299_v20, %v303_v29  ;;  %430 = vrot.lane.b32.xlu2 %v408_v30, %s1517_s24  ;;  %v320_v46 = vshll.u32 %v1667_v31, 16  ;;  %v1679_v47 = vsel %vm405_vm0, %v424_v33, %v425_v34  ;;  %v286_v48 = vpack.c.b16 %v278_v42, %v278_v42 }
  0x29   : > { %389 = vrot.lane.b32.xlu1 %v304_v36, %s1518_s27  ;;  %v347_v51 = vor.u32 %v346_v38, %v342_v37  ;;  %v351_v52 = vrot.slane %v349_v41, 1  ;;  %v354_v53 = vshrl.u32 %v1644_v5, 16  ;;  %v1686_v55 = vsel %vm292_vm1, %v371_v39, %v375_v40 }
  0x2a   : > { %v322_v49 = vrot.slane %v320_v46, 1  ;;  %v325_v54 = vshll.u32 %v286_v48, 16  ;;  %v358_v56 = vrot.slane %v356_v44, 1  ;;  %v361_v57 = vshll.u32 %v289_v43, 16 }
  0x2b   : > { %v283_v60 = vunpack.c.l.b16 %v221_v50  ;;  %v1697_v63 = vsel %vm292_vm1, %v347_v51, %v351_v52  ;;  %v421_v4 = vrot.slane %v1644_v5, 1  ;;  %v422_v7 = vrot.slane %v289_v43, 1 }
  0x2c   : > { %v323_v58 = vor.u32 %v322_v49, %v318_v45  ;;  %v327_v59 = vrot.slane %v325_v54, 1  ;;  %v359_v1 = vor.u32 %v358_v56, %v354_v53  ;;  %v363_v3 = vrot.slane %v361_v57, 1  ;;  %v1314_v53 = vld [vmem:[%s1633_s20 + $0x60] sm:$0xff] }
  0x2d   : > { %v291_v9 = vpack.c.b16 %v283_v60, %v283_v60  ;;  %v380_v10 = vshll.u32 %v1694_v62, 16  ;;  %v277_v12 = vunpack.c.l.b16 %v203_v8  ;;  %v1710_v13 = vsel %vm405_vm0, %v421_v4, %v422_v7 }
  0x2e   : > { %442 = vrot.lane.b32.xlu0 %v1679_v47, %s1517_s24  ;;  %v1691_v61 = vsel %vm292_vm1, %v323_v58, %v327_v59  ;;  %v1707_v11 = vsel %vm292_vm1, %v359_v1, %v363_v3  ;;  %v378_v14 = vshrl.u32 %v1694_v62, 16  ;;  %v308_v19 = vshll.u32 %v1714_v17, 16 }
  0x2f   : > { %v382_v15 = vrot.slane %v380_v10, 1  ;;  %v385_v16 = vshll.u32 %v291_v9, 16  ;;  %v285_v18 = vpack.c.b16 %v277_v12, %v277_v12  ;;  %v412_v23 = vrot.slane %v1667_v31, 1 }
  0x30   : > { %393 = vrot.lane.b32.xlu2 %v1691_v61, %s1518_s27  ;;  %v413_v24 = vrot.slane %v286_v48, 1  ;;  %v306_v26 = vshrl.u32 %v1714_v17, 16  ;;  %v310_v27 = vrot.slane %v308_v19, 1  ;;  %v279_v30 = vunpack.c.l.b16 %v209_v22  ;;  %v224_v48 = vld [vmem:[%s1633_s20 + $0x68] sm:$0x1] }
  0x31   : > { %401 = vrot.lane.b32.xlu1 %v1686_v55, %s1518_s27  ;;  %v383_v20 = vor.u32 %v382_v15, %v378_v14  ;;  %v387_v21 = vrot.slane %v385_v16, 1  ;;  %v313_v28 = vshll.u32 %v285_v18, 16  ;;  %v409_v36 = vrot.slane %v1714_v17, 1 }
  0x32   : > { %v1735_v33 = vsel %vm405_vm0, %v412_v23, %v413_v24  ;;  %v311_v34 = vor.u32 %v310_v27, %v306_v26  ;;  %v410_v37 = vrot.slane %v285_v18, 1  ;;  %v287_v38 = vpack.c.b16 %v279_v30, %v279_v30  ;;  %v728_v24 = vld [vmem:[%s2381_s1 + $0x10] sm:$0x3]  ;;  %v1317_v30 = vld [vmem:[%s2381_s1 + $0x8] sm:$0xff] }
  0x33   : > { %v1727_v29 = vsel %vm292_vm1, %v383_v20, %v387_v21  ;;  %v315_v35 = vrot.slane %v313_v28, 1  ;;  %v332_v39 = vshll.u32 %v1732_v32, 16  ;;  %v330_v42 = vshrl.u32 %v1732_v32, 16 }
  0x34   : > { %v411_v41 = vsel %vm405_vm0, %v409_v36, %v410_v37  ;;  %v337_v44 = vshll.u32 %v287_v38, 16  ;;  %v427_v49 = vrot.slane %v1694_v62, 1  ;;  %v428_v50 = vrot.slane %v291_v9, 1  ;;  %v227_v37 = vld [vmem:[%s1633_s20 + $0x74] sm:$0x1] }
  0x35   : > { %v316_v40 = vsel %vm292_vm1, %v311_v34, %v315_v35  ;;  %v334_v43 = vrot.slane %v332_v39, 1  ;;  %v468_v52 = vunpack.c.l.b16 %v224_v48  ;;  %v473_v57 = vshll.u32 %v1314_v53, 16  ;;  %v1316_v35 = vld [vmem:[%s2381_s1] sm:$0xff] }
  0x36   : > { %397 = vrot.lane.b32.xlu0 %v1697_v63, %s1518_s27  ;;  %v339_v46 = vrot.slane %v337_v44, 1  ;;  %v1761_v54 = vsel %vm405_vm0, %v427_v49, %v428_v50  ;;  %v471_v58 = vshrl.u32 %v1314_v53, 16  ;;  %v415_v4 = vrot.slane %v1732_v32, 1 }
  0x37   : > { %v335_v45 = vor.u32 %v334_v43, %v330_v42  ;;  %v469_v56 = vpack.c.b16 %v468_v52, %v468_v52  ;;  %v475_v59 = vrot.slane %v473_v57, 1  ;;  %v416_v7 = vrot.slane %v287_v38, 1 }
  0x38   : > { %509 = vrot.lane.b32.xlu2 %v1710_v13, %s1520_s29  ;;  %v498_v10 = vrot.slane %v1314_v53, 1  ;;  %v539_v38 = vunpack.c.l.b16 %v227_v37 }
  0x39   : > { %490 = vrot.lane.b32.xlu1 %v1707_v11, %s1519_s28  ;;  %v1753_v51 = vsel %vm292_vm1, %v335_v45, %v339_v46  ;;  %v478_v60 = vshll.u32 %v469_v56, 16  ;;  %v476_v1 = vor.u32 %v475_v59, %v471_v58  ;;  %v1776_v9 = vsel %vm405_vm0, %v415_v4, %v416_v7 }
  0x3a   : > { %v499_v12 = vrot.slane %v469_v56, 1 }
  0x3b   : > { %v480_v3 = vrot.slane %v478_v60, 1 }
  0x3c   : > { %v500_v14 = vsel %vm405_vm0, %v498_v10, %v499_v12 }
  0x3d   : > { %v481_v8 = vsel %vm292_vm1, %v476_v1, %v480_v3 }
  0x3e   : > { %451 = vrot.lane.b32.xlu0 %v1714_v17, %s1516_s21 }
  0x40   : > { %494 = vrot.lane.b32.xlu2 %v1727_v29, %s1519_s28 }
  0x41   : > { %463 = vrot.lane.b32.xlu1 %v1694_v62, %s1516_s21 }
  0x46   : > { %434 = vrot.lane.b32.xlu0 %v1735_v33, %s1517_s24 }
  0x48   : > { %501 = vrot.lane.b32.xlu2 %v411_v41, %s1520_s29 }
  0x49   : > { %482 = vrot.lane.b32.xlu1 %v316_v40, %s1519_s28 }
  0x4e   : > { %530 = vrot.lane.b32.xlu0 %v1647_v6, %s1521_s4 }
  0x50   : > { %486 = vrot.lane.b32.xlu2 %v1753_v51, %s1519_s28 }
  0x51   : > { %455 = vrot.lane.b32.xlu1 %v1732_v32, %s1516_s21 }
  0x56   : > { %513 = vrot.lane.b32.xlu0 %v1761_v54, %s1520_s29 }
  0x58   : > { %580 = vrot.lane.b32.xlu2 %v1679_v47, %s1523_s6 }
  0x59   : > { %561 = vrot.lane.b32.xlu1 %v1686_v55, %s1522_s5 }
  0x5e   : > { %522 = vrot.lane.b32.xlu0 %v1667_v31, %s1521_s4 }
  0x60   : > { %565 = vrot.lane.b32.xlu2 %v481_v8, %s1522_s5 }
  0x61   : > { %534 = vrot.lane.b32.xlu1 %v1314_v53, %s1521_s4 }
  0x66   : > { %505 = vrot.lane.b32.xlu0 %v1776_v9, %s1520_s29 }
  0x68   : > { %584 = vrot.lane.b32.xlu2 %v500_v14, %s1523_s6 }
  0x69   : > { %553 = vrot.lane.b32.xlu1 %v1691_v61, %s1522_s5 }
  0x6e   : > { %526 = vrot.lane.b32.xlu0 %v1636_v0, %s1521_s4 }
  0x70   : > { %399 = vrot.lane.b32.xlu2 %v1707_v11, %s1518_s27 }
  0x71   : > { %572 = vrot.lane.b32.xlu1 %v1735_v33, %s1523_s6 }
  0x76   : > { %557 = vrot.lane.b32.xlu0 %v1697_v63, %s1522_s5 }
  0x78   : > { %403 = vrot.lane.b32.xlu2 %v1727_v29, %s1518_s27 }
  0x79   : > { %576 = vrot.lane.b32.xlu1 %v1660_v25, %s1523_s6 }
  0x7a   : > { %v1796_v15 = vpop.permute.xlu2 %459 }
  0x7e   : > { %440 = vrot.lane.b32.xlu0 %v1710_v13, %s1517_s24 }
  0x80   : > { %444 = vrot.lane.b32.xlu2 %v1761_v54, %s1517_s24 }
  0x81   : > { %391 = vrot.lane.b32.xlu1 %v316_v40, %s1518_s27 }
  0x82   : > { %v431_v16 = vpop.permute.xlu2 %430 }
  0x86   : > { %461 = vrot.lane.b32.xlu0 %v1647_v6, %s1516_s21 }
  0x88   : > { %453 = vrot.lane.b32.xlu2 %v1667_v31, %s1516_s21 }
  0x89   : > { %432 = vrot.lane.b32.xlu1 %v411_v41, %s1517_s24  ;;  %v540_v41 = vpack.c.b16 %v539_v38, %v539_v38 }
  0x8a   : > { %v1808_v18 = vpop.permute.xlu2 %393 }
  0x8b   : > { %v570_v57 = vrot.slane %v540_v41, 1 }
  0x8e   : > { %492 = vrot.lane.b32.xlu0 %v1686_v55, %s1519_s28 }
  0x90   : > { %436 = vrot.lane.b32.xlu2 %v1776_v9, %s1517_s24 }
  0x91   : > { %395 = vrot.lane.b32.xlu1 %v1753_v51, %s1518_s27  ;;  %s1150_s27 = sadd.s32 %s1498_s15, %s1302_s10 }
  0x92   : > { %v1816_v19 = vpop.permute.xlu2 %509 }
  0x96   : > { %465 = vrot.lane.b32.xlu0 %v1314_v53, %s1516_s21 }
  0x98   : > { %v1819_v20 = vpop.permute.xlu0 %438  ;;  %532 = vrot.lane.b32.xlu2 %v1694_v62, %s1521_s4 }
  0x99   : > { %511 = vrot.lane.b32.xlu1 %v1679_v47, %s1520_s29  ;;  %v738_v47 = vunpack.c.l.b16 %v728_v24 }
  0x9a   : > { %v1827_v22 = vpop.permute.xlu2 %494 }
  0x9b   : > { %v390_v55 = vpop.permute.xlu1 %389  ;;  %v741_v27 = vpack.c.b16 %v738_v47, %v738_v47 }
  0x9c   : > { %v590_v21 = vsel %vm588_vm2, %v1640_v2, %v390_v55 }
  0x9d   : > { %v1830_v23 = vsel %vm605_vm3, %v590_v21, %v431_v16  ;;  %v763_v2 = vsel %vm761_vm4, %v741_v27, 0  ;;  %vm1111_vm4 = vcmask 326656  }
  0x9e   : > { %484 = vrot.lane.b32.xlu0 %v1691_v61, %s1519_s28  ;;  %1319 = vmatpush.bf16.msra.mxu2 %v763_v2 }
  0x9f   : > { %1320 = vmatpush.bf16.msra.mxu3 %v763_v2  ;;  %770 = vmatpush.bf16.msra.mxu0 %v763_v2 }
  0xa0   : > { %v1837_v26 = vpop.permute.xlu0 %442  ;;  %515 = vrot.lane.b32.xlu2 %v500_v14, %s1520_s29  ;;  %1318 = vmatpush.bf16.msra.mxu1 %v763_v2  ;;  %v594_v2 = vsel %vm588_vm2, %v1667_v31, %v1808_v18 }
  0xa1   : > { %496 = vrot.lane.b32.xlu1 %v481_v8, %s1519_s28 }
  0xa2   : > { %v1848_v61 = vpop.permute.xlu2 %501  ;;  %1322 = vmatpush.bf16.msra.mxu2 %v1317_v30 }
  0xa3   : > { %v1841_v28 = vpop.permute.xlu1 %401  ;;  %1323 = vmatpush.bf16.msra.mxu3 %v1317_v30  ;;  %771 = vmatpush.bf16.msra.mxu0 %v1317_v30 }
  0xa4   : > { %1321 = vmatpush.bf16.msra.mxu1 %v1317_v30  ;;  %v602_v3 = vsel %vm588_vm2, %v1647_v6, %v1841_v28 }
  0xa5   : > { %v619_v10 = vsel %vm605_vm3, %v602_v3, %v1837_v26 }
  0xa6   : > { %457 = vrot.lane.b32.xlu0 %v1636_v0, %s1516_s21  ;;  %1325 = vmatpush.bf16.msra.mxu2 %v1316_v35  ;;  %s1525_s21 = smov 48  }
  0xa7   : > { %1326 = vmatpush.bf16.msra.mxu3 %v1316_v35  ;;  %772 = vmatpush.bf16.msra.mxu0 %v1316_v35 }
  0xa8   : > { %v398_v34 = vpop.permute.xlu0 %397  ;;  %524 = vrot.lane.b32.xlu2 %v1732_v32, %s1521_s4  ;;  %1324 = vmatpush.bf16.msra.mxu1 %v1316_v35 }
  0xa9   : > { %503 = vrot.lane.b32.xlu1 %v1735_v33, %s1520_s29  ;;  %v1315_v33 = vld [vmem:[%s1633_s20 + $0x6c] sm:$0xff]  ;;  %s1524_s20 = smov 40  }
  0xaa   : > { %v1865_v40 = vpop.permute.xlu2 %486  ;;  %v544_v42 = vshll.u32 %v1315_v33, 16  ;;  %v542_v44 = vshrl.u32 %v1315_v33, 16 }
  0xab   : > { %v491_v36 = vpop.permute.xlu1 %490 }
  0xac   : > { %v546_v45 = vrot.slane %v544_v42, 1 }
  0xae   : > { %563 = vrot.lane.b32.xlu0 %v1727_v29, %s1522_s5  ;;  %v549_v29 = vshll.u32 %v540_v41, 16  ;;  %v547_v48 = vor.u32 %v546_v45, %v542_v44 }
  0xb0   : > { %v1860_v39 = vpop.permute.xlu0 %451  ;;  %507 = vrot.lane.b32.xlu2 %v1660_v25, %s1520_s29  ;;  %v551_v49 = vrot.slane %v549_v29, 1  ;;  %v598_v25 = vsel %vm588_vm2, %v1636_v0, %v398_v34  ;;  %s1528_s29 = smov 56  }
  0xb1   : > { %488 = vrot.lane.b32.xlu1 %v1697_v63, %s1519_s28  ;;  %v615_v56 = vsel %vm605_vm3, %v598_v25, %v1819_v20  ;;  %v624_v26 = vsel %vm622_vm5, %v1830_v23, %v1860_v39 }
  0xb2   : > { %v581_v50 = vpop.permute.xlu2 %580  ;;  %v552_v52 = vsel %vm292_vm1, %v547_v48, %v551_v49  ;;  %v632_v0 = vsel %vm622_vm5, %v615_v56, %v1796_v15  ;;  %vm838_vm1 = vcmask 1046534  }
  0xb3   : > { %v464_v43 = vpop.permute.xlu1 %463  ;;  %v649_v60 = vsel %vm639_vm6, %v632_v0, %v491_v36 }
  0xb4   : > { %v636_v12 = vsel %vm622_vm5, %v619_v10, %v464_v43 }
  0xb5   : > { %v653_v15 = vsel %vm639_vm6, %v636_v12, %v1827_v22 }
  0xb6   : > { %536 = vrot.lane.b32.xlu0 %v1315_v33, %s1521_s4 }
  0xb8   : > { %v435_v46 = vpop.permute.xlu0 %434  ;;  %528 = vrot.lane.b32.xlu2 %v1644_v5, %s1521_s4 }
  0xb9   : > { %582 = vrot.lane.b32.xlu1 %v1761_v54, %s1523_s6  ;;  %v569_v54 = vrot.slane %v1315_v33, 1  ;;  %v611_v30 = vsel %vm605_vm3, %v594_v2, %v435_v46 }
  0xbb   : > { %v483_v63 = vpop.permute.xlu1 %482  ;;  %v571_v59 = vsel %vm405_vm0, %v569_v54, %v570_v57  ;;  %vm835_vm0 = vcmask 1045509  }
  0xbc   : > { %v641_v22 = vsel %vm639_vm6, %v624_v26, %v483_v63 }
  0xbd   : > { %v658_v28 = vsel %vm656_vm7, %v641_v22, %v1848_v61 }
  0xbe   : > { %555 = vrot.lane.b32.xlu0 %v1753_v51, %s1522_s5  ;;  %v566_v51 = vpop.permute.xlu2 %565 }
  0xc0   : > { %v531_v53 = vpop.permute.xlu0 %530  ;;  %559 = vrot.lane.b32.xlu2 %v1707_v11, %s1522_s5  ;;  %v666_v11 = vsel %vm656_vm7, %v649_v60, %v1816_v19 }
  0xc1   : > { %567 = vrot.lane.b32.xlu1 %v552_v52, %s1522_s5  ;;  %v683_v4 = vsel %vm673_vm8, %v666_v11, %v531_v53  ;;  %s1530_s5 = smov 88  }
  0xc3   : > { %v456_v58 = vpop.permute.xlu1 %455 }
  0xc4   : > { %v628_v35 = vsel %vm622_vm5, %v611_v30, %v456_v58 }
  0xc5   : > { %v645_v31 = vsel %vm639_vm6, %v628_v35, %v1865_v40 }
  0xc6   : > { %574 = vrot.lane.b32.xlu0 %v1776_v9, %s1523_s6  ;;  %v585_v14 = vpop.permute.xlu2 %584 }
  0xc8   : > { %v514_v1 = vpop.permute.xlu0 %513 }
  0xc9   : > { %586 = vrot.lane.b32.xlu1 %v571_v59, %s1523_s6  ;;  %v670_v16 = vsel %vm656_vm7, %v653_v15, %v514_v1 }
  0xcb   : > { %v562_v7 = vpop.permute.xlu1 %561 }
  0xcc   : > { %v700_v8 = vsel %vm690_vm9, %v683_v4, %v562_v7 }
  0xcd   : > { %v717_v9 = vsel %vm707_vm10, %v700_v8, %v581_v50 }
  0xce   : > { %1297 = vmatmul.msk.bf16.vlgmr.msra.gmra.mxu2 %vm744_vm11, %v717_v9  ;;  %578 = vrot.lane.b32.xlu0 %v1710_v13, %s1523_s6  ;;  %v400_v13 = vpop.permute.xlu2 %399 }
  0xcf   : > { %v600_v59 = vsel %vm588_vm2, %v1644_v5, %v400_v13 }
  0xd0   : > { %v523_v6 = vpop.permute.xlu0 %522 }
  0xd1   : > { %v675_v34 = vsel %vm673_vm8, %v658_v28, %v523_v6 }
  0xd3   : > { %v535_v19 = vpop.permute.xlu1 %534 }
  0xd4   : > { %v687_v20 = vsel %vm673_vm8, %v670_v16, %v535_v19 }
  0xd5   : > { %v704_v55 = vsel %vm690_vm9, %v687_v20, %v566_v51 }
  0xd6   : > { %v721_v21 = vsel %vm707_vm10, %v704_v55, %v585_v14  ;;  %v404_v37 = vpop.permute.xlu2 %403 }
  0xd7   : > { %1299 = vmatmul.msk.bf16.vlgmr.msra.gmra.mxu3 %vm744_vm11, %v721_v21  ;;  %v604_v16 = vsel %vm588_vm2, %v1694_v62, %v404_v37 }
  0xd8   : > { %v506_v24 = vpop.permute.xlu0 %505 }
  0xd9   : > { %v662_v18 = vsel %vm656_vm7, %v645_v31, %v506_v24 }
  0xdb   : > { %v554_v47 = vpop.permute.xlu1 %553 }
  0xdc   : > { %v692_v36 = vsel %vm690_vm9, %v675_v34, %v554_v47 }
  0xde   : > { %v445_v43 = vpop.permute.xlu2 %444 }
  0xdf   : > { %v621_v13 = vsel %vm605_vm3, %v604_v16, %v445_v43 }
  0xe0   : > { %v527_v27 = vpop.permute.xlu0 %526 }
  0xe1   : > { %v679_v61 = vsel %vm673_vm8, %v662_v18, %v527_v27 }
  0xe3   : > { %v573_v23 = vpop.permute.xlu1 %572 }
  0xe4   : > { %v709_v38 = vsel %vm707_vm10, %v692_v36, %v573_v23 }
  0xe5   : > { %1293 = vmatmul.msk.bf16.vlgmr.msra.gmra.mxu0 %vm744_vm11, %v709_v38 }
  0xe6   : > { %v454_v29 = vpop.permute.xlu2 %453 }
  0xe8   : > { %v558_v39 = vpop.permute.xlu0 %557 }
  0xe9   : > { %v696_v33 = vsel %vm690_vm9, %v679_v61, %v558_v39 }
  0xeb   : > { %v577_v41 = vpop.permute.xlu1 %576 }
  0xec   : > { %v713_v42 = vsel %vm707_vm10, %v696_v33, %v577_v41 }
  0xed   : > { %1295 = vmatmul.msk.bf16.vlgmr.msra.gmra.mxu1 %vm744_vm11, %v713_v42 }
  0xee   : > { %v437_v40 = vpop.permute.xlu2 %436 }
  0xf0   : > { %v441_v44 = vpop.permute.xlu0 %440 }
  0xf1   : > { %v617_v1 = vsel %vm605_vm3, %v600_v59, %v441_v44 }
  0xf3   : > { %v392_v45 = vpop.permute.xlu1 %391 }
  0xf4   : > { %v592_v5 = vsel %vm588_vm2, %v1714_v17, %v392_v45 }
  0xf6   : > { %v533_v25 = vpop.permute.xlu2 %532 }
  0xf8   : > { %v462_v46 = vpop.permute.xlu0 %461 }
  0xf9   : > { %v634_v11 = vsel %vm622_vm5, %v617_v1, %v462_v46 }
  0xfb   : > { %v433_v48 = vpop.permute.xlu1 %432 }
  0xfc   : > { %v609_v6 = vsel %vm605_vm3, %v592_v5, %v433_v48 }
  0xfd   : > { %v626_v20 = vsel %vm622_vm5, %v609_v6, %v454_v29 }
  0xfe   : > { %v516_v54 = vpop.permute.xlu2 %515 }
 0x100   : > { %v493_v49 = vpop.permute.xlu0 %492 }
 0x101   : > { %v651_v3 = vsel %vm639_vm6, %v634_v11, %v493_v49 }
 0x103   : > { %v396_v63 = vpop.permute.xlu1 %395 }
 0x104   : > { %v596_v19 = vsel %vm588_vm2, %v1732_v32, %v396_v63  ;;  %vm841_vm2 = vcmask 1047559  }
 0x105   : > { %v613_v26 = vsel %vm605_vm3, %v596_v19, %v437_v40 }
 0x106   : > { %v525_v0 = vpop.permute.xlu2 %524 }
 0x108   : > { %v466_v50 = vpop.permute.xlu0 %465 }
 0x109   : > { %v638_v17 = vsel %vm622_vm5, %v621_v13, %v466_v50 }
 0x10b   : > { %v512_v52 = vpop.permute.xlu1 %511 }
 0x10c   : > { %v668_v4 = vsel %vm656_vm7, %v651_v3, %v512_v52 }
 0x10d   : > { %v685_v9 = vsel %vm673_vm8, %v668_v4, %v533_v25 }
 0x10e   : > { %v508_v8 = vpop.permute.xlu2 %507 }
 0x110   : > { %v485_v53 = vpop.permute.xlu0 %484 }
 0x111   : > { %v643_v55 = vsel %vm639_vm6, %v626_v20, %v485_v53 }
 0x113   : > { %v497_v56 = vpop.permute.xlu1 %496 }
 0x114   : > { %v655_v22 = vsel %vm639_vm6, %v638_v17, %v497_v56 }
 0x115   : > { %v672_v30 = vsel %vm656_vm7, %v655_v22, %v516_v54 }
 0x116   : > { %v529_v21 = vpop.permute.xlu2 %528 }
 0x118   : > { %v458_v57 = vpop.permute.xlu0 %457 }
 0x119   : > { %v630_v62 = vsel %vm622_vm5, %v613_v26, %v458_v57  ;;  %vm1113_vm5 = vcmask 392192  }
 0x11b   : > { %v504_v58 = vpop.permute.xlu1 %503 }
 0x11c   : > { %v660_v47 = vsel %vm656_vm7, %v643_v55, %v504_v58 }
 0x11d   : > { %v677_v27 = vsel %vm673_vm8, %v660_v47, %v525_v0 }
 0x11e   : > { %v560_v31 = vpop.permute.xlu2 %559 }
 0x120   : > { %v564_v51 = vpop.permute.xlu0 %563 }
 0x121   : > { %v702_v10 = vsel %vm690_vm9, %v685_v9, %v564_v51 }
 0x123   : > { %v489_v60 = vpop.permute.xlu1 %488 }
 0x124   : > { %v647_v32 = vsel %vm639_vm6, %v630_v62, %v489_v60 }
 0x125   : > { %v664_v35 = vsel %vm656_vm7, %v647_v32, %v508_v8  ;;  %vm1115_vm7 = vcmask 457728  }
 0x126   : > { %v681_v18 = vsel %vm673_vm8, %v664_v35, %v529_v21 }
 0x127   : > { %v698_v61 = vsel %vm690_vm9, %v681_v18, %v560_v31 }
 0x128   : > { %v537_v7 = vpop.permute.xlu0 %536 }
 0x129   : > { %v689_v36 = vsel %vm673_vm8, %v672_v30, %v537_v7 }
 0x12b   : > { %v583_v12 = vpop.permute.xlu1 %582 }
 0x12c   : > { %v719_v14 = vsel %vm707_vm10, %v702_v10, %v583_v12 }
 0x12d   : > { %1298 = vmatmul.msk.bf16.gmra.mxu2 %vm744_vm11, %v719_v14 }
 0x130   : > { %v556_v15 = vpop.permute.xlu0 %555 }
 0x131   : > { %v694_v2 = vsel %vm690_vm9, %v677_v27, %v556_v15 }
 0x133   : > { %v568_v24 = vpop.permute.xlu1 %567 }
 0x134   : > { %v706_v37 = vsel %vm690_vm9, %v689_v36, %v568_v24  ;;  %vm1117_vm9 = vcmask 523264  }
 0x138   : > { %v575_v28 = vpop.permute.xlu0 %574 }
 0x139   : > { %v711_v34 = vsel %vm707_vm10, %v694_v2, %v575_v28 }
 0x13a   : > { %1294 = vmatmul.msk.bf16.gmra.mxu0 %vm744_vm11, %v711_v34 }
 0x13b   : > { %v587_v23 = vpop.permute.xlu1 %586 }
 0x13c   : > { %v723_v38 = vsel %vm707_vm10, %v706_v37, %v587_v23 }
 0x13d   : > { %1300 = vmatmul.msk.bf16.gmra.mxu3 %vm744_vm11, %v723_v38 }
 0x140   : > { %v579_v39 = vpop.permute.xlu0 %578 }
 0x141   : > { %v715_v33 = vsel %vm707_vm10, %v698_v61, %v579_v39 }
 0x142   : > { %1296 = vmatmul.msk.bf16.gmra.mxu1 %vm744_vm11, %v715_v33  ;;  %vm1127_vm11 = vcmask 850944  }
 0x151   : > { %v1974_v41 = vpop.f32.mrf.mxu2 }
 0x152   : > { %v884_v29 = vrot.slane %v1974_v41, 7  ;;  %v919_v46 = vrot.slane %v1974_v41, 1  ;;  %v850_v48 = vrot.slane %v1974_v41, 5  ;;  %v936_v49 = vrot.slane %v1974_v41, 2 }
 0x153   : > { %v867_v40 = vrot.slane %v1974_v41, 6  ;;  %v953_v63 = vrot.slane %v1974_v41, 3 }
 0x159   : > { %v1980_v44 = vpop.f32.mrf.mxu2 }
 0x15a   : > { %v1976_v42 = vpop.f32.mrf.mxu3  ;;  %v994_v25 = vrot.slane %v1980_v44, 5  ;;  %v977_v52 = vrot.slane %v1980_v44, 4 }
 0x15b   : > { %v888_v54 = vrot.slane %v1976_v42, 5  ;;  %v922_v57 = vrot.slane %v1976_v42, 7  ;;  %v854_v58 = vrot.slane %v1976_v42, 3  ;;  %v871_v0 = vrot.slane %v1976_v42, 4 }
 0x15c   : > { %v905_v60 = vrot.slane %v1976_v42, 6  ;;  %v957_v1 = vrot.slane %v1976_v42, 1 }
 0x162   : > { %v1978_v43 = vpop.f32.mrf.mxu0  ;;  %v1999_v51 = vpop.f32.mrf.mxu3 }
 0x163   : > { %v878_v4 = vrot.slane %v1978_v43, 3  ;;  %v912_v7 = vrot.slane %v1978_v43, 5  ;;  %v844_v10 = vrot.slane %v1978_v43, 1  ;;  %v929_v12 = vrot.slane %v1978_v43, 6 }
 0x164   : > { %v861_v14 = vrot.slane %v1978_v43, 2  ;;  %v895_v5 = vrot.slane %v1978_v43, 4  ;;  %v998_v15 = vrot.slane %v1999_v51, 3  ;;  %v946_v16 = vrot.slane %v1978_v43, 7 }
 0x16a   : > { %v1982_v45 = vpop.f32.mrf.mxu1  ;;  %v2001_v59 = vpop.f32.mrf.mxu0 }
 0x16b   : > { %v881_v55 = vrot.slane %v1982_v45, 1  ;;  %v915_v21 = vrot.slane %v1982_v45, 3  ;;  %v846_v17 = vrot.slane %v1982_v45, 7  ;;  %v932_v26 = vrot.slane %v1982_v45, 4 }
 0x16c   : > { %v898_v22 = vrot.slane %v1982_v45, 2  ;;  %v988_v62 = vrot.slane %v2001_v59, 1  ;;  %v949_v32 = vrot.slane %v1982_v45, 5  ;;  %v1039_v27 = vrot.slane %v2001_v59, 4 }
 0x16d   : > { %v1005_v2 = vrot.slane %v2001_v59, 2 }
 0x172   : > { %v2025_v47 = vpop.f32.mrf.mxu1 }
 0x173   : > { %v990_v23 = vrot.slane %v2025_v47, 7  ;;  %v973_v38 = vrot.slane %v2025_v47, 6  ;;  %v1042_v31 = vrot.slane %v2025_v47, 2 }
 0x1b0   : > { %v2015_v6 = vpop.f32.mrf.mxu2 }
 0x1b1   : > { %v886_v11 = vrot.slane %v2015_v6, 6  ;;  %v852_v39 = vrot.slane %v2015_v6, 4  ;;  %v938_v34 = vrot.slane %v2015_v6, 1  ;;  %v869_v30 = vrot.slane %v2015_v6, 5 }
 0x1b2   : > { %v903_v28 = vrot.slane %v2015_v6, 7 }
 0x1b7   : > { %v779_v37 = vpop.f32.mrf.mxu0 }
 0x1b8   : > { %v879_v33 = vrot.slane %v779_v37, 2  ;;  %v913_v9 = vrot.slane %v779_v37, 4  ;;  %v930_v50 = vrot.slane %v779_v37, 5  ;;  %v862_v3 = vrot.slane %v779_v37, 1  ;;  %v2045_v36 = vpop.f32.mrf.mxu2 }
 0x1b9   : > { %v896_v8 = vrot.slane %v779_v37, 3  ;;  %v947_v24 = vrot.slane %v779_v37, 6  ;;  %v822_v13 = vrot.slane %v779_v37, 7  ;;  %v845_v35 = vsel %vm823_vm12, %v779_v37, %v844_v10 }
 0x1ba   : > { %v880_v61 = vsel %vm823_vm12, %v879_v33, %v878_v4  ;;  %v914_v53 = vsel %vm823_vm12, %v913_v9, %v912_v7  ;;  %v931_v20 = vsel %vm823_vm12, %v930_v50, %v929_v12  ;;  %v863_v56 = vsel %vm823_vm12, %v862_v3, %v861_v14 }
 0x1bb   : > { %v897_v18 = vsel %vm823_vm12, %v896_v8, %v895_v5  ;;  %v948_v10 = vsel %vm823_vm12, %v947_v24, %v946_v16  ;;  %v847_v4 = vsel %vm826_vm13, %v846_v17, %v845_v35  ;;  %v996_v7 = vrot.slane %v2045_v36, 4 }
 0x1bc   : > { %v955_v50 = vrot.slane %v2015_v6, 2  ;;  %v2068_v3 = vsel %vm823_vm12, %v822_v13, %v1978_v43  ;;  %v882_v8 = vsel %vm826_vm13, %v881_v55, %v880_v61  ;;  %v916_v12 = vsel %vm826_vm13, %v915_v21, %v914_v53 }
 0x1bd   : > { %v933_v14 = vsel %vm826_vm13, %v932_v26, %v931_v20  ;;  %v864_v5 = vsel %vm826_vm13, %v1982_v45, %v863_v56  ;;  %v899_v17 = vsel %vm826_vm13, %v898_v22, %v897_v18  ;;  %v950_v43 = vsel %vm826_vm13, %v949_v32, %v948_v10 }
 0x1bf   : > { %v2059_v37 = vpop.f32.mrf.mxu0  ;;  %v2061_v19 = vpop.f32.mrf.mxu1 }
 0x1c0   : > { %v2070_v9 = vpop.f32.mrf.mxu3  ;;  %v971_v16 = vrot.slane %v2059_v37, 7  ;;  %v883_v24 = vsel %vm829_vm14, %v2061_v19, %v882_v8  ;;  %v917_v20 = vrot.slane %v2061_v19, 2  ;;  %v848_v13 = vrot.slane %v2061_v19, 6 }
 0x1c1   : > { %v885_v55 = vsel %vm832_vm15, %v884_v29, %v883_v24  ;;  %v890_v53 = vrot.slane %v2070_v9, 4  ;;  %v924_v21 = vrot.slane %v2070_v9, 6  ;;  %v856_v26 = vrot.slane %v2070_v9, 2 }
 0x1c2   : > { %v887_v56 = vsel %vm835_vm0, %v886_v11, %v885_v55  ;;  %v934_v22 = vrot.slane %v2061_v19, 3  ;;  %v918_v29 = vsel %vm829_vm14, %v917_v20, %v916_v12  ;;  %v941_v35 = vrot.slane %v2070_v9, 7 }
 0x1c3   : > { %v889_v32 = vsel %vm838_vm1, %v888_v54, %v887_v56  ;;  %v865_v18 = vrot.slane %v2061_v19, 7  ;;  %v920_v11 = vsel %vm832_vm15, %v919_v46, %v918_v29  ;;  %v849_v33 = vsel %vm829_vm14, %v848_v13, %v847_v4 }
 0x1c4   : > { %v891_v61 = vsel %vm841_vm2, %v890_v53, %v889_v32  ;;  %v935_v10 = vsel %vm829_vm14, %v934_v22, %v933_v14  ;;  %v921_v54 = vsel %vm835_vm0, %v2015_v6, %v920_v11  ;;  %v851_v8 = vsel %vm832_vm15, %v850_v48, %v849_v33 }
 0x1c5   : > { %892 = vrot.lane.b32.xlu0 %v891_v61, %s1521_s4  ;;  %v937_v12 = vsel %vm832_vm15, %v936_v49, %v935_v10  ;;  %v866_v24 = vsel %vm829_vm14, %v865_v18, %v864_v5  ;;  %v923_v4 = vsel %vm838_vm1, %v922_v57, %v921_v54  ;;  %v853_v14 = vsel %vm835_vm0, %v852_v39, %v851_v8  ;;  %s1529_s4 = smov 96  }
 0x1c6   : > { %v939_v55 = vsel %vm835_vm0, %v938_v34, %v937_v12  ;;  %v868_v48 = vsel %vm832_vm15, %v867_v40, %v866_v24  ;;  %v925_v53 = vsel %vm841_vm2, %v924_v21, %v923_v4  ;;  %v855_v49 = vsel %vm838_vm1, %v854_v58, %v853_v14 }
 0x1c7   : > { %v2114_v46 = vpop.f32.mrf.mxu1  ;;  %v940_v5 = vsel %vm838_vm1, %v1976_v42, %v939_v55  ;;  %v870_v20 = vsel %vm835_vm0, %v869_v30, %v868_v48  ;;  %v1006_v57 = vrot.slane %v2059_v37, 1  ;;  %v1040_v39 = vrot.slane %v2059_v37, 3  ;;  %926 = vrot.lane.b32.xlu2 %v925_v53, %s1524_s20  ;;  %s1243_s20 = sshll.u32 %s185_s11, 3 }
 0x1c8   : > { %v857_v34 = vsel %vm841_vm2, %v856_v26, %v855_v49  ;;  %v979_v40 = vrot.slane %v2045_v36, 3  ;;  %v942_v21 = vsel %vm841_vm2, %v941_v35, %v940_v5  ;;  %v900_v58 = vrot.slane %v2061_v19, 1  ;;  %v2165_v11 = vpop.f32.mrf.mxu3  ;;  %s187_s15 = scalar_lea.vmem [#allocation2], %s1243_s20  ;;  %s1440_s20 = scalar_lea.hbm %s2383_s3, 32 }
 0x1c9   : > { %858 = vrot.lane.b32.xlu1 %v857_v34, %s1517_s24  ;;  %v989_v30 = vsel %vm823_vm12, %v2059_v37, %v988_v62  ;;  %v992_v56 = vrot.slane %v2114_v46, 6  ;;  %v872_v13 = vsel %vm838_vm1, %v871_v0, %v870_v20  ;;  %v873_v26 = vrot.slane %v2070_v9, 3  ;;  %s1526_s24 = smov 72  }
 0x1ca   : > { %v991_v22 = vsel %vm826_vm13, %v990_v23, %v989_v30  ;;  %v951_v32 = vrot.slane %v2061_v19, 4  ;;  %v901_v29 = vsel %vm829_vm14, %v900_v58, %v899_v17  ;;  %v972_v62 = vsel %vm823_vm12, %v971_v16, %v2001_v59 }
 0x1cb   : > { %v993_v35 = vsel %vm829_vm14, %v992_v56, %v991_v22  ;;  %v975_v18 = vrot.slane %v2114_v46, 5  ;;  %v902_v0 = vsel %vm832_vm15, %v1974_v41, %v901_v29  ;;  %v974_v17 = vsel %vm826_vm13, %v973_v38, %v972_v62 }
 0x1cc   : > { %v995_v61 = vsel %vm832_vm15, %v994_v25, %v993_v35  ;;  %v952_v23 = vsel %vm829_vm14, %v951_v32, %v950_v43  ;;  %v904_v16 = vsel %vm835_vm0, %v903_v28, %v902_v0  ;;  %v1023_v38 = vrot.slane %v2059_v37, 2 }
 0x1cd   : > { %943 = vrot.lane.b32.xlu0 %v942_v21, %s1525_s21  ;;  %v997_v33 = vsel %vm835_vm0, %v996_v7, %v995_v61  ;;  %v954_v25 = vsel %vm832_vm15, %v953_v63, %v952_v23  ;;  %v976_v43 = vsel %vm829_vm14, %v975_v18, %v974_v17  ;;  %v906_v10 = vsel %vm838_vm1, %v905_v60, %v904_v16  ;;  %s1303_s21 = sshll.u32 %s1150_s27, 3 }
 0x1ce   : > { %v907_v54 = vrot.slane %v2070_v9, 5  ;;  %v978_v28 = vsel %vm832_vm15, %v977_v52, %v976_v43  ;;  %v1091_v7 = vrot.slane %v2059_v37, 6  ;;  %v874_v8 = vsel %vm841_vm2, %v873_v26, %v872_v13  ;;  %s1152_s16 = scalar_lea.hbm %s2383_s3, %s1303_s21 }
 0x1cf   : > { %v999_v63 = vsel %vm838_vm1, %v998_v15, %v997_v33  ;;  %v956_v12 = vsel %vm835_vm0, %v955_v50, %v954_v25  ;;  %875 = vrot.lane.b32.xlu2 %v874_v8, %s1519_s28  ;;  %v1000_v24 = vrot.slane %v2165_v11, 2  ;;  %v980_v52 = vsel %vm835_vm0, %v979_v40, %v978_v28  ;;  %s1527_s28 = smov 64  }
 0x1d0   : > { %v908_v60 = vsel %vm841_vm2, %v907_v54, %v906_v10  ;;  %v1041_v4 = vsel %vm823_vm12, %v1040_v39, %v1039_v27  ;;  %v1057_v14 = vrot.slane %v2059_v37, 4  ;;  %v1044_v15 = vrot.slane %v2114_v46, 1 }
 0x1d1   : > { %909 = vrot.lane.b32.xlu1 %v908_v60, %s1523_s6  ;;  %v1047_v50 = vrot.slane %v2045_v36, 7  ;;  %v1007_v55 = vsel %vm823_vm12, %v1006_v57, %v1005_v2  ;;  %v1001_v48 = vsel %vm841_vm2, %v1000_v24, %v999_v63  ;;  %v958_v53 = vsel %vm838_vm1, %v957_v1, %v956_v12  ;;  %s1531_s6 = smov 80  }
 0x1d2   : > { %v1043_v27 = vsel %vm826_vm13, %v1042_v31, %v1041_v4  ;;  %v1009_v49 = vrot.slane %v2114_v46, 7  ;;  %v2386_v5 = vrot.slane %v1999_v51, 2  ;;  %v1008_v2 = vsel %vm826_vm13, %v2025_v47, %v1007_v55 }
 0x1d3   : > { %v1045_v39 = vsel %vm829_vm14, %v1044_v15, %v1043_v27  ;;  %v2387_v57 = vrot.slane %v2001_v59, 3  ;;  %v2388_v40 = vrot.slane %v2025_v47, 1  ;;  %v2389_v58 = vrot.slane %v2001_v59, 7 }
 0x1d4   : > { %v982_v20 = vsel %vm838_vm1, %v2386_v5, %v980_v52  ;;  %v1046_v1 = vsel %vm832_vm15, %v1980_v44, %v1045_v39  ;;  %v1010_v31 = vsel %vm829_vm14, %v1009_v49, %v1008_v2  ;;  %v983_v56 = vrot.slane %v2165_v11, 1 }
 0x1d5   : > { %v1024_v34 = vsel %vm823_vm12, %v1023_v38, %v2387_v57  ;;  %v1092_v30 = vsel %vm823_vm12, %v1091_v7, %v2389_v58  ;;  %1002 = vrot.lane.b32.xlu0 %v1001_v48, %s1526_s24  ;;  %v1048_v13 = vsel %vm835_vm0, %v1047_v50, %v1046_v1  ;;  %v1095_v22 = vrot.slane %v2114_v46, 4 }
 0x1d6   : > { %v1026_v21 = vsel %vm826_vm13, %v2388_v40, %v1024_v34  ;;  %v1074_v32 = vrot.slane %v2059_v37, 5  ;;  %v1013_v29 = vrot.slane %v2045_v36, 5  ;;  %v2390_v35 = vrot.slane %v1980_v44, 7 }
 0x1d7   : > { %v1027_v26 = vsel %vm829_vm14, %v2114_v46, %v1026_v21  ;;  %v1030_v18 = vrot.slane %v2045_v36, 6  ;;  %v984_v0 = vsel %vm841_vm2, %v983_v56, %v982_v20  ;;  %v2391_v61 = vrot.slane %v1999_v51, 6 }
 0x1d8   : > { %v1029_v62 = vsel %vm832_vm15, %v2390_v35, %v1027_v26  ;;  %v2392_v17 = vrot.slane %v1980_v44, 6  ;;  %v2393_v37 = vrot.slane %v2025_v47, 5  ;;  %v959_v25 = vsel %vm841_vm2, %v2070_v9, %v958_v53  ;;  %985 = vrot.lane.b32.xlu2 %v984_v0, %s1527_s28 }
 0x1d9   : > { %v1050_v23 = vsel %vm838_vm1, %v2391_v61, %v1048_v13  ;;  %v1051_v43 = vrot.slane %v2165_v11, 5  ;;  %v2394_v10 = vrot.slane %v2001_v59, 5  ;;  %960 = vrot.lane.b32.xlu1 %v959_v25, %s1528_s29  ;;  %v1031_v28 = vsel %vm835_vm0, %v1030_v18, %v1029_v62 }
 0x1da   : > { %v1012_v16 = vsel %vm832_vm15, %v2392_v17, %v1010_v31  ;;  %v1094_v33 = vsel %vm826_vm13, %v2393_v37, %v1092_v30  ;;  %v1099_v7 = vrot.slane %v2045_v36, 2  ;;  %v1061_v8 = vrot.slane %v2114_v46, 2 }
 0x1db   : > { %v1096_v38 = vsel %vm829_vm14, %v1095_v22, %v1094_v33  ;;  %v1058_v54 = vsel %vm823_vm12, %v1057_v14, %v2394_v10  ;;  %v1076_v63 = vrot.slane %v2025_v47, 4  ;;  %v1052_v12 = vsel %vm841_vm2, %v1051_v43, %v1050_v23 }
 0x1dc   : > { %v1014_v60 = vsel %vm835_vm0, %v1013_v29, %v1012_v16  ;;  %v2395_v24 = vrot.slane %v2001_v59, 6  ;;  %v1078_v4 = vrot.slane %v2114_v46, 3  ;;  %v2396_v14 = vrot.slane %v1980_v44, 3 }
 0x1dd   : > { %v2397_v50 = vrot.slane %v2025_v47, 3  ;;  %v2398_v53 = vrot.slane %v1982_v45, 6  ;;  %v2399_v59 = vrot.slane %v1999_v51, 5  ;;  %v828_v20 = vrot.slane %v2061_v19, 5  ;;  %1053 = vrot.lane.b32.xlu0 %v1052_v12, %s1529_s4 }
 0x1de   : > { %v1075_v52 = vsel %vm823_vm12, %v1074_v32, %v2395_v24  ;;  %v1098_v15 = vsel %vm832_vm15, %v2396_v14, %v1096_v38  ;;  %v2400_v47 = vrot.slane %v1999_v51, 4  ;;  %v1034_v45 = vrot.slane %v2165_v11, 4 }
 0x1df   : > { %v1060_v55 = vsel %vm826_vm13, %v2397_v50, %v1058_v54  ;;  %v1077_v48 = vsel %vm826_vm13, %v1076_v63, %v1075_v52  ;;  %v827_v27 = vsel %vm826_vm13, %v2398_v53, %v2068_v3  ;;  %v1033_v49 = vsel %vm838_vm1, %v2399_v59, %v1031_v28 }
 0x1e0   : > { %v1062_v46 = vsel %vm829_vm14, %v1061_v8, %v1060_v55  ;;  %v1079_v5 = vsel %vm829_vm14, %v1078_v4, %v1077_v48  ;;  %v1016_v39 = vsel %vm838_vm1, %v2400_v47, %v1014_v60  ;;  %v1101_v3 = vrot.slane %v1999_v51, 1 }
 0x1e1   : > { %v834_v2 = vrot.slane %v2015_v6, 3  ;;  %v1017_v57 = vrot.slane %v2165_v11, 3  ;;  %v1100_v34 = vsel %vm835_vm0, %v1099_v7, %v1098_v15  ;;  %v2401_v1 = vrot.slane %v1980_v44, 2 }
 0x1e2   : > { %v830_v31 = vsel %vm829_vm14, %v828_v20, %v827_v27  ;;  %v1035_v40 = vsel %vm841_vm2, %v1034_v45, %v1033_v49  ;;  %v2402_v21 = vrot.slane %v1980_v44, 1  ;;  %v1082_v30 = vrot.slane %v2045_v36, 1  ;;  %v1419_v27 = vld [vmem:[%s2382_s2] ss:$0 sm:$0xff] }
 0x1e3   : > { %v1081_v19 = vsel %vm832_vm15, %v2401_v1, %v1079_v5  ;;  %v2403_v6 = vrot.slane %v1974_v41, 4  ;;  %v1018_v13 = vsel %vm841_vm2, %v1017_v57, %v1016_v39  ;;  %1036 = vrot.lane.b32.xlu2 %v1035_v40, %s1530_s5  ;;  %v840_v22 = vrot.slane %v2070_v9, 1  ;;  %s1154_s5 = sshll.u32 %s187_s15, 4  ;;  %s1155_s5 = int_to_ptr.vmem [resolvable:$true] %s1154_s5 }
 0x1e4   : > { %v1064_v58 = vsel %vm832_vm15, %v2402_v21, %v1062_v46  ;;  %1019 = vrot.lane.b32.xlu1 %v1018_v13, %s1531_s6  ;;  %v1102_v44 = vsel %vm838_vm1, %v1101_v3, %v1100_v34  ;;  %v1083_v32 = vsel %vm835_vm0, %v1082_v30, %v1081_v19  ;;  %v2404_v29 = vrot.slane %v1976_v42, 2  ;;  %s1156_s6 = sshll.u32 %s1152_s16, 4  ;;  %s1157_s6 = int_to_ptr.hbm [resolvable:$true] %s1156_s6 }
 0x1e5   : > { %v833_v56 = vsel %vm832_vm15, %v2403_v6, %v830_v31  ;;  %v1065_v35 = vsel %vm835_vm0, %v2045_v36, %v1064_v58  ;;  %v1066_v18 = vrot.slane %v1999_v51, 7  ;;  %v1103_v9 = vsel %vm841_vm2, %v2165_v11, %v1102_v44 }
 0x1e6   : > { %v836_v26 = vsel %vm835_vm0, %v834_v2, %v833_v56  ;;  %v1084_v0 = vsel %vm838_vm1, %v1999_v51, %v1083_v32  ;;  %1104 = vrot.lane.b32.xlu0 %v1103_v9, %s1532_s7  ;;  %v1085_v42 = vrot.slane %v2165_v11, 7  ;;  %v1068_v23 = vrot.slane %v2165_v11, 6  ;;  %s1140_s7 = scalar_lea.sflag [#allocation3], %s185_s11 }
 0x1e7   : > { %v839_v41 = vsel %vm838_vm1, %v2404_v29, %v836_v26  ;;  %v1067_v61 = vsel %vm838_vm1, %v1066_v18, %v1065_v35  ;;  %vm1129_vm12 = vcmask 916480   ;;  %vm1131_vm13 = vcmask 982016  }
 0x1e8   : > { %v842_v62 = vsel %vm841_vm2, %v840_v22, %v839_v41  ;;  %v1086_v36 = vsel %vm841_vm2, %v1085_v42, %v1084_v0  ;;  %v1069_v17 = vsel %vm841_vm2, %v1068_v23, %v1067_v61 }
 0x1eb   : > { %1087 = vrot.lane.b32.xlu2 %v1086_v36, %s1533_s8  ;;  %s1434_s8 = sshra.s32 %s1157_s6, 4  ;;  %s1435_s8 = int_to_ptr.hbm [resolvable:$true] %s1434_s8 }
 0x1ec   : > { %1070 = vrot.lane.b32.xlu1 %v1069_v17, %s1534_s9  ;;  %s1436_s9 = scalar_lea.hbm %s1435_s8, 8  ;;  %p1441_p4 = scmp.lt.s32.totalorder %s1435_s8, %s2383_s3 }
 0x1ed   : > { %p1437_p0 = scmp.ne.s32.totalorder %s1435_s8, %s1436_s9  ;;  %p1442_p5 = scmp.lt.s32.totalorder %s1440_s20, %s1436_s9 }
 0x1ef   : > { %p1438_p1 = pnand %p1437_p0, %p1606_p3  ;;  %p1443_p6 = por %p1442_p5, %p1441_p4 }
 0x1f1   : > { %p1439_p2 = pneg %p1438_p1 }
 0x1f3   : > { %p1444_p7 = pnand %p1443_p6, %p1439_p2 }
 0x221   : > { %v927_v16 = vpop.permute.xlu2 %926 }
 0x229   : > { %v876_v51 = vpop.permute.xlu2 %875 }
 0x232   : > { %v986_v28 = vpop.permute.xlu2 %985 }
 0x237   : > { %v893_v37 = vpop.permute.xlu0 %892 }
 0x23b   : > { %v859_v33 = vpop.permute.xlu1 %858 }
 0x23c   : > { %v1107_v43 = vsel %vm605_vm3, %v842_v62, %v859_v33  ;;  %vm1119_vm3 = vcmask 588800  }
 0x23d   : > { %v1108_v38 = vsel %vm639_vm6, %v1107_v43, %v876_v51  ;;  %v1037_v52 = vpop.permute.xlu2 %1036  ;;  %vm1121_vm6 = vcmask 654336  }
 0x23e   : > { %v1109_v11 = vsel %vm673_vm8, %v1108_v38, %v893_v37  ;;  %vm1123_vm8 = vcmask 719872  }
 0x23f   : > { %v944_v25 = vpop.permute.xlu0 %943 }
 0x243   : > { %v910_v10 = vpop.permute.xlu1 %909 }
 0x244   : > { %v1110_v54 = vsel %vm707_vm10, %v1109_v11, %v910_v10  ;;  %vm1125_vm10 = vcmask 785408  }
 0x245   : > { %v1112_v8 = vsel %vm1111_vm4, %v1110_v54, %v927_v16  ;;  %v1088_v59 = vpop.permute.xlu2 %1087 }
 0x246   : > { %v1114_v12 = vsel %vm1113_vm5, %v1112_v8, %v944_v25 }
 0x247   : > { %v1003_v7 = vpop.permute.xlu0 %1002 }
 0x24b   : > { %v961_v63 = vpop.permute.xlu1 %960 }
 0x24c   : > { %v1116_v60 = vsel %vm1115_vm7, %v1114_v12, %v961_v63 }
 0x24d   : > { %v1118_v24 = vsel %vm1117_vm9, %v1116_v60, %v986_v28 }
 0x24e   : > { %v1120_v15 = vsel %vm1119_vm3, %v1118_v24, %v1003_v7 }
 0x24f   : > { %v1054_v4 = vpop.permute.xlu0 %1053 }
 0x256   : > { %v1020_v14 = vpop.permute.xlu1 %1019 }
 0x257   : > { %v1122_v50 = vsel %vm1121_vm6, %v1120_v15, %v1020_v14 }
 0x258   : > { %v1124_v55 = vsel %vm1123_vm8, %v1122_v50, %v1037_v52  ;;  %v1105_v46 = vpop.permute.xlu0 %1104 }
 0x259   : > { %v1126_v53 = vsel %vm1125_vm10, %v1124_v55, %v1054_v4 }
 0x25e   : > { %v1071_v48 = vpop.permute.xlu1 %1070 }
 0x25f   : > { %v1128_v49 = vsel %vm1127_vm11, %v1126_v53, %v1071_v48 }
 0x260   : > { %v1130_v5 = vsel %vm1129_vm12, %v1128_v49, %v1088_v59 }
 0x261   : > { %v1132_v20 = vsel %vm1131_vm13, %v1130_v5, %v1105_v46 }
 0x262   : > { %v1137_v47 = vadd.f32 %v1419_v27, %v1132_v20 }
 0x264   : > { %1138 = vst [vmem:[%s187_s15] sm:$0xff] %v1137_v47 }
 0x265   : > { %1447 = shalt.err (!%p1444_p7)
}
 0x266   : > { %1329 = dma.vmem_to_hbm [thread:$0]  (%p1606_p3), %s1155_s5, 128, %s1157_s6, %s1140_s7  }
 0x267 PF: > { %p1335_p9 = scmp.ge.s32.totalorder %s1514_s19, 2  ;;  %s1168_s11 = sand.u32 1, %s1486_s12  }
 0x268   : > { %s1169_s28 = scalar_lea.sflag [#allocation3], %s1168_s11 }
 0x269   : > { %p1332_p10 = pnand %p1335_p9, %p1615_p8 }
 0x26b   : > { %p1333_p11 = pneg %p1332_p10 }
 0x26d   : > { %1481 = dma.done.wait (%p1333_p11), %s1169_s28, 128  }
 0x26e   : > { %1483 = vsyncadd (%p1333_p11), %s1169_s28, 4294967168  ;;  %s16_s19 = sadd.s32 1, %s1514_s19   ;;  %s2405_s12 = smov %s1490_s13 }
 0x26f   : > { %p13_p12 = scmp.ge.s32.totalorder %s16_s19, 6   ;;  %s2406_s13 = smov %s1494_s14 }
 0x270   : > { %s2407_s14 = smov %s1624_s30  ;;  %s2408_s15 = smov %s1506_s17 }
 0x271   : > { %s2409_s16 = smov %s1510_s18  ;;  %s2410_s17 = smov %s2413_s22 }
 0x272   : > { %s2411_s18 = smov %s2417_s23  ;;  %15 = sbr.rel (!%p13_p12) target bundleno = 5 (0x5), region = 67 }
 0x277   :  { %1175 = vsyncpa [#allocation3], 1 }
 0x278   :  { %1177 = vsyncpa [#allocation3 + $0x1], 1 }

</bundles_post_ra>
